<compile_context>
chip_gen: v6e
topology: v6e:2x2x1
jax: 0.10.0
libtpu: 0.0.40
codegen_flags: <defaults>
</compile_context>

<pallas_src>
import math
import functools

import jax
import jax.numpy as jnp
from jax.experimental import pallas as pl
from jax.experimental.pallas import tpu as pltpu

IN_FEATURES = 28 * 28            # 784 (multiple of 8 sublanes, full-extent block)
H1_PAD = 128                     # 100 -> 128
H2_PAD = 128                     # 50  -> 128
OUT_PAD = 128                    # 10  -> 128 (lane-dense output block)
NUM_CLASSES = 10
NEG_BIG = -1e30                  # effectively -inf for padded logit lanes (f32 bias)


def mlp_kernel(x_ref, w1_ref, b1_ref, w2_ref, b2_ref, w3_ref, b3_ref, out_ref):
    # fc1 (+ folded BN) -> relu.  x already bf16 in HBM; astype is a no-op then.
    x = x_ref[...].astype(jnp.bfloat16)
    h1 = jnp.dot(x, w1_ref[...], preferred_element_type=jnp.float32) + b1_ref[...]
    h1 = jnp.maximum(h1, 0.0)
    # dropout: identity in eval mode

    # fc2 (+ folded BN) -> relu
    h2 = jnp.dot(h1.astype(jnp.bfloat16), w2_ref[...],
                 preferred_element_type=jnp.float32) + b2_ref[...]
    h2 = jnp.maximum(h2, 0.0)
    # dropout: identity in eval mode

    # fc3 -> log_softmax.  Padded lanes carry f32 bias -1e30, so they never win the
    # max and contribute exp(~-1e30)=0 to the sum; real lanes are exact in f32.
    logits = jnp.dot(h2.astype(jnp.bfloat16), w3_ref[...],
                     preferred_element_type=jnp.float32) + b3_ref[...]
    m = jnp.max(logits, axis=-1, keepdims=True)
    z = logits - m
    lse = jnp.log(jnp.sum(jnp.exp(z), axis=-1, keepdims=True))
    out_ref[...] = (z - lse).astype(out_ref.dtype)   # bf16 store, lane-dense 128


@functools.partial(jax.jit,
                   static_argnames=("tile_b", "return_padded", "core_parallel"))
def mlp_forward(x_flat, params, tile_b=512, return_padded=True, core_parallel=False):
    """x_flat: (n, 784), ideally bf16 in HBM.  params: padded bf16 weights + f32 biases.

    Returns (n, 128) bf16 padded log-probs by default (lanes 10..127 are ~ -1e30);
    with return_padded=False, slices to the real (n, 10) classes.
    """
    n = x_flat.shape[0]
    tile_b = max(8, (tile_b // 8) * 8)          # keep sublane-aligned
    grid = (pl.cdiv(n, tile_b),)

    out_dtype = jnp.bfloat16

    w_spec = lambda shape: pl.BlockSpec(shape, lambda i: (0, 0))  # VMEM-resident
    in_specs = [
        pl.BlockSpec((tile_b, IN_FEATURES), lambda i: (i, 0)),    # x tiles (pipelined)
        w_spec((IN_FEATURES, H1_PAD)),                            # w1
        w_spec((1, H1_PAD)),                                      # b1 (f32)
        w_spec((H1_PAD, H2_PAD)),                                 # w2
        w_spec((1, H2_PAD)),                                      # b2 (f32)
        w_spec((H2_PAD, OUT_PAD)),                                # w3
        w_spec((1, OUT_PAD)),                                     # b3 (f32, -1e30 pads)
    ]
    out_specs = pl.BlockSpec((tile_b, OUT_PAD), lambda i: (i, 0))

    # Advisory cost hint: bandwidth-heavy, low-FLOP custom call.
    x_bytes = x_flat.size * x_flat.dtype.itemsize
    param_bytes = sum(p.size * p.dtype.itemsize for p in params)
    out_bytes = n * OUT_PAD * jnp.dtype(out_dtype).itemsize
    cost = pl.CostEstimate(
        flops=2 * n * (IN_FEATURES * H1_PAD + H1_PAD * H2_PAD + H2_PAD * OUT_PAD),
        transcendentals=n * (OUT_PAD + 1),                # exp per lane + log per row
        bytes_accessed=x_bytes + param_bytes + out_bytes,
    )

    # Batch axis: "parallel" everywhere; CORE_PARALLEL splits it across the two
    # TensorCores on v7x (two independent DMA pipelines for this HBM-bound kernel).
    sem = (pltpu.CORE_PARALLEL,) if core_parallel else ("parallel",)
    # Only raise the scoped-VMEM limit when huge tiles actually need it (v5e default
    # scoped VMEM is 16 MiB; v7x physical VMEM is only 64 MiB -- stay modest).
    vmem_limit = (48 * 1024 * 1024) if tile_b > 1024 else None

    out_padded = pl.pallas_call(
        mlp_kernel,
        out_shape=jax.ShapeDtypeStruct((n, OUT_PAD), out_dtype),
        grid=grid,
        in_specs=in_specs,
        out_specs=out_specs,
        compiler_params=pltpu.CompilerParams(
            dimension_semantics=sem,
            vmem_limit_bytes=vmem_limit),
        cost_estimate=cost,
    )(x_flat, *params)

    if return_padded:
        return out_padded            # (n, 128) bf16; consumer ignores lanes 10..127
    return out_padded[:, :NUM_CLASSES]


# ---------------- host-side parameter construction ----------------

def xavier_uniform(key, shape, gain):
    # shape is (out_features, in_features) like torch.nn.Linear.weight
    fan_out, fan_in = shape
    bound = gain * math.sqrt(6.0 / (fan_in + fan_out))
    return jax.random.uniform(key, shape, dtype=jnp.float32,
                              minval=-bound, maxval=bound)


def linear_bias_init(key, fan_in, out_features):
    # torch.nn.Linear default bias init: U(-1/sqrt(fan_in), 1/sqrt(fan_in))
    bound = 1.0 / math.sqrt(fan_in)
    return jax.random.uniform(key, (out_features,), dtype=jnp.float32,
                              minval=-bound, maxval=bound)


def bn_affine(num_features, eps=1e-5):
    # PyTorch BatchNorm1d init: gamma=1, beta=0, running_mean=0, running_var=1
    gamma = jnp.ones((num_features,), jnp.float32)
    beta = jnp.zeros((num_features,), jnp.float32)
    mean = jnp.zeros((num_features,), jnp.float32)
    var = jnp.ones((num_features,), jnp.float32)
    scale = gamma / jnp.sqrt(var + eps)
    shift = beta - mean * scale
    return scale, shift


def _pad2d(a, rows, cols):
    return jnp.pad(a, ((0, rows - a.shape[0]), (0, cols - a.shape[1])))


def make_params(key, batch_norm=True):
    gain = math.sqrt(2.0)
    k = jax.random.split(key, 6)
    w1 = xavier_uniform(k[0], (100, IN_FEATURES), gain)   # torch layout (out, in)
    b1 = linear_bias_init(k[1], IN_FEATURES, 100)
    w2 = xavier_uniform(k[2], (50, 100), gain)
    b2 = linear_bias_init(k[3], 100, 50)
    w3 = xavier_uniform(k[4], (10, 50), gain)
    b3 = linear_bias_init(k[5], 50, 10)

    if batch_norm:
        s1, t1 = bn_affine(100)
        s2, t2 = bn_affine(50)
    else:
        s1, t1 = jnp.ones((100,), jnp.float32), jnp.zeros((100,), jnp.float32)
        s2, t2 = jnp.ones((50,), jnp.float32), jnp.zeros((50,), jnp.float32)

    # Fold eval-mode BN into the linear layers (exact: running stats are constants).
    w1t = w1.T * s1[None, :]          # (784, 100)
    b1f = b1 * s1 + t1                # (100,)
    w2t = w2.T * s2[None, :]          # (100, 50)
    b2f = b2 * s2 + t2                # (50,)
    w3t = w3.T                        # (50, 10)

    # Zero-pad hidden/output dims to 128 lanes; padded logit lanes get -1e30 bias.
    # Weights bf16 (MXU); biases stay f32 so the -1e30 trick is never narrowed.
    w1p = _pad2d(w1t, IN_FEATURES, H1_PAD).astype(jnp.bfloat16)
    b1p = jnp.pad(b1f, (0, H1_PAD - 100)).reshape(1, H1_PAD)
    w2p = _pad2d(w2t, H1_PAD, H2_PAD).astype(jnp.bfloat16)
    b2p = jnp.pad(b2f, (0, H2_PAD - 50)).reshape(1, H2_PAD)
    w3p = _pad2d(w3t, H2_PAD, OUT_PAD).astype(jnp.bfloat16)
    b3p = jnp.pad(b3, (0, OUT_PAD - NUM_CLASSES),
                  constant_values=NEG_BIG).reshape(1, OUT_PAD)

    # Unfolded / unpadded f32 copies for the pure-JAX reference check.
    ref_params = (w1t, b1f, w2t, b2f, w3t, b3)
    return (w1p, b1p, w2p, b2p, w3p, b3p), ref_params


def reference_forward(x_flat, ref_params):
    w1t, b1, w2t, b2, w3t, b3 = ref_params
    h1 = jnp.maximum(x_flat @ w1t + b1, 0.0)
    h2 = jnp.maximum(h1 @ w2t + b2, 0.0)
    logits = h2 @ w3t + b3
    return jax.nn.log_softmax(logits, axis=-1)


if __name__ == "__main__":
    key = jax.random.PRNGKey(0)
    k_x, k_p = jax.random.split(key)

    batch = 32
    tile_b = 8   # test-only tile (exercises grid=(4,)). Use 512-1024 in production.

    # NCHW input like the PyTorch module expects (N, 1, 28, 28).
    # The *data path* delivers bf16 to HBM (cast at the producer, not inside the
    # wrapper), so the dominant x DMA stream is half-width.
    x_nchw = jax.random.normal(k_x, (batch, 1, 28, 28), dtype=jnp.float32)
    x_flat_bf16 = x_nchw.reshape(batch, IN_FEATURES).astype(jnp.bfloat16)

    params, ref_params = make_params(k_p, batch_norm=True)

    # Default: padded (n, 128) bf16 log-probs; lanes 10..127 are ~ -1e30.
    out_padded = mlp_forward(x_flat_bf16, params, tile_b=tile_b)
    out_padded = jax.block_until_ready(out_padded)
    assert out_padded.shape == (batch, OUT_PAD)
    assert out_padded.dtype == jnp.bfloat16

    out = out_padded[:, :NUM_CLASSES].astype(jnp.float32)

    # log_softmax rows should sum (in prob space) to ~1 (bf16 output tolerance).
    assert bool(jnp.all(jnp.abs(jnp.sum(jnp.exp(out), axis=1) - 1.0) < 2e-2))

    # Match the f32 pure-JAX reference (run on the same bf16-quantized input) within
    # bf16-matmul + bf16-output tolerance.
    ref = reference_forward(x_flat_bf16.astype(jnp.float32), ref_params)
    assert bool(jnp.max(jnp.abs(out - ref)) < 0.15)

    # Also exercise the sliced path once (still bf16, so the slice copy is half-width).
    out_sliced = jax.block_until_ready(
        mlp_forward(x_flat_bf16, params, tile_b=tile_b, return_padded=False))
    assert out_sliced.shape == (batch, NUM_CLASSES)

    print("KERNEL_OK")
</pallas_src>

<mosaic_0001>
module attributes {stable_mosaic.version = 11 : i64} {
  func.func @mlp_kernel(%arg0: i32, %arg1: memref<8x784xbf16, #tpu.memory_space<vmem>>, %arg2: memref<784x128xbf16, #tpu.memory_space<vmem>>, %arg3: memref<1x128xf32, #tpu.memory_space<vmem>>, %arg4: memref<128x128xbf16, #tpu.memory_space<vmem>>, %arg5: memref<1x128xf32, #tpu.memory_space<vmem>>, %arg6: memref<128x128xbf16, #tpu.memory_space<vmem>>, %arg7: memref<1x128xf32, #tpu.memory_space<vmem>>, %arg8: memref<8x128xbf16, #tpu.memory_space<vmem>>) attributes {dimension_semantics = [#tpu.dimension_semantics<parallel>], iteration_bounds = array<i64: 4>, scalar_prefetch = 0 : i64, scratch_operands = 0 : i64, tpu.core_type = #tpu.core_type<tc>, window_params = [{transform_indices = @transform_0, window_bounds = array<i64: 8, 784>}, {pipeline_mode = #tpu.pipeline_mode<synchronous>, transform_indices = @transform_1, window_bounds = array<i64: 784, 128>}, {pipeline_mode = #tpu.pipeline_mode<synchronous>, transform_indices = @transform_2, window_bounds = array<i64: 1, 128>}, {pipeline_mode = #tpu.pipeline_mode<synchronous>, transform_indices = @transform_3, window_bounds = array<i64: 128, 128>}, {pipeline_mode = #tpu.pipeline_mode<synchronous>, transform_indices = @transform_4, window_bounds = array<i64: 1, 128>}, {pipeline_mode = #tpu.pipeline_mode<synchronous>, transform_indices = @transform_5, window_bounds = array<i64: 128, 128>}, {pipeline_mode = #tpu.pipeline_mode<synchronous>, transform_indices = @transform_6, window_bounds = array<i64: 1, 128>}, {transform_indices = @transform_7, window_bounds = array<i64: 8, 128>}]} {
    %c0 = arith.constant 0 : index
    %c0_0 = arith.constant 0 : index
    %0 = vector.load %arg1[%c0, %c0_0] : memref<8x784xbf16, #tpu.memory_space<vmem>>, vector<8x784xbf16>
    %c0_1 = arith.constant 0 : index
    %c0_2 = arith.constant 0 : index
    %1 = vector.load %arg2[%c0_1, %c0_2] : memref<784x128xbf16, #tpu.memory_space<vmem>>, vector<784x128xbf16>
    %cst = arith.constant dense<0.000000e+00> : vector<8x128xf32>
    %2 = tpu.matmul %0, %1, %cst {dimension_numbers = #tpu.dot_dimension_numbers<[1], [0], [0], [1], [0, 0, 1, 1], [], []>} : vector<8x784xbf16>, vector<784x128xbf16>, vector<8x128xf32> -> vector<8x128xf32>
    %c0_3 = arith.constant 0 : index
    %c0_4 = arith.constant 0 : index
    %3 = vector.load %arg3[%c0_3, %c0_4] : memref<1x128xf32, #tpu.memory_space<vmem>>, vector<1x128xf32>
    %4 = vector.broadcast %3 : vector<1x128xf32> to vector<8x128xf32>
    %5 = arith.addf %2, %4 : vector<8x128xf32>
    %cst_5 = arith.constant 0.000000e+00 : f32
    %6 = vector.broadcast %cst_5 : f32 to vector<8x128xf32>
    %7 = arith.maximumf %5, %6 : vector<8x128xf32>
    %8 = arith.truncf %7 : vector<8x128xf32> to vector<8x128xbf16>
    %c0_6 = arith.constant 0 : index
    %c0_7 = arith.constant 0 : index
    %9 = vector.load %arg4[%c0_6, %c0_7] : memref<128x128xbf16, #tpu.memory_space<vmem>>, vector<128x128xbf16>
    %cst_8 = arith.constant dense<0.000000e+00> : vector<8x128xf32>
    %10 = tpu.matmul %8, %9, %cst_8 {dimension_numbers = #tpu.dot_dimension_numbers<[1], [0], [0], [1], [0, 0, 1, 1], [], []>} : vector<8x128xbf16>, vector<128x128xbf16>, vector<8x128xf32> -> vector<8x128xf32>
    %c0_9 = arith.constant 0 : index
    %c0_10 = arith.constant 0 : index
    %11 = vector.load %arg5[%c0_9, %c0_10] : memref<1x128xf32, #tpu.memory_space<vmem>>, vector<1x128xf32>
    %12 = vector.broadcast %11 : vector<1x128xf32> to vector<8x128xf32>
    %13 = arith.addf %10, %12 : vector<8x128xf32>
    %cst_11 = arith.constant 0.000000e+00 : f32
    %14 = vector.broadcast %cst_11 : f32 to vector<8x128xf32>
    %15 = arith.maximumf %13, %14 : vector<8x128xf32>
    %16 = arith.truncf %15 : vector<8x128xf32> to vector<8x128xbf16>
    %c0_12 = arith.constant 0 : index
    %c0_13 = arith.constant 0 : index
    %17 = vector.load %arg6[%c0_12, %c0_13] : memref<128x128xbf16, #tpu.memory_space<vmem>>, vector<128x128xbf16>
    %cst_14 = arith.constant dense<0.000000e+00> : vector<8x128xf32>
    %18 = tpu.matmul %16, %17, %cst_14 {dimension_numbers = #tpu.dot_dimension_numbers<[1], [0], [0], [1], [0, 0, 1, 1], [], []>} : vector<8x128xbf16>, vector<128x128xbf16>, vector<8x128xf32> -> vector<8x128xf32>
    %c0_15 = arith.constant 0 : index
    %c0_16 = arith.constant 0 : index
    %19 = vector.load %arg7[%c0_15, %c0_16] : memref<1x128xf32, #tpu.memory_space<vmem>>, vector<1x128xf32>
    %20 = vector.broadcast %19 : vector<1x128xf32> to vector<8x128xf32>
    %21 = arith.addf %18, %20 : vector<8x128xf32>
    %cst_17 = arith.constant dense<0xFF800000> : vector<8xf32>
    %22 = vector.multi_reduction <maximumf>, %21, %cst_17 [1] : vector<8x128xf32> to vector<8xf32>
    %23 = vector.shape_cast %22 : vector<8xf32> to vector<8x1xf32>
    %24 = vector.broadcast %23 : vector<8x1xf32> to vector<8x128xf32>
    %25 = arith.subf %21, %24 : vector<8x128xf32>
    %26 = math.exp %25 : vector<8x128xf32>
    %cst_18 = arith.constant dense<0.000000e+00> : vector<8xf32>
    %27 = vector.multi_reduction <add>, %26, %cst_18 [1] : vector<8x128xf32> to vector<8xf32>
    %28 = vector.shape_cast %27 : vector<8xf32> to vector<8x1xf32>
    %29 = math.log %28 : vector<8x1xf32>
    %30 = vector.broadcast %29 : vector<8x1xf32> to vector<8x128xf32>
    %31 = arith.subf %25, %30 : vector<8x128xf32>
    %32 = arith.truncf %31 : vector<8x128xf32> to vector<8x128xbf16>
    %c0_19 = arith.constant 0 : index
    %c0_20 = arith.constant 0 : index
    %33 = vector.load %arg8[%c0_19, %c0_20] : memref<8x128xbf16, #tpu.memory_space<vmem>>, vector<8x128xbf16>
    tpu.vector_store %arg8[%c0_19, %c0_20], %32 {strides = array<i32>} : memref<8x128xbf16, #tpu.memory_space<vmem>>, vector<8x128xbf16>,
    return
  }
  func.func @transform_0(%arg0: i32) -> (i32, i32) {
    %c0_i32 = arith.constant 0 : i32
    %c0_i32_0 = arith.constant 0 : i32
    return %arg0, %c0_i32 : i32, i32
  }
  func.func @transform_1(%arg0: i32) -> (i32, i32) {
    %c0_i32 = arith.constant 0 : i32
    %c0_i32_0 = arith.constant 0 : i32
    %c0_i32_1 = arith.constant 0 : i32
    return %c0_i32, %c0_i32_0 : i32, i32
  }
  func.func @transform_2(%arg0: i32) -> (i32, i32) {
    %c0_i32 = arith.constant 0 : i32
    %c0_i32_0 = arith.constant 0 : i32
    %c0_i32_1 = arith.constant 0 : i32
    return %c0_i32, %c0_i32_0 : i32, i32
  }
  func.func @transform_3(%arg0: i32) -> (i32, i32) {
    %c0_i32 = arith.constant 0 : i32
    %c0_i32_0 = arith.constant 0 : i32
    %c0_i32_1 = arith.constant 0 : i32
    return %c0_i32, %c0_i32_0 : i32, i32
  }
  func.func @transform_4(%arg0: i32) -> (i32, i32) {
    %c0_i32 = arith.constant 0 : i32
    %c0_i32_0 = arith.constant 0 : i32
    %c0_i32_1 = arith.constant 0 : i32
    return %c0_i32, %c0_i32_0 : i32, i32
  }
  func.func @transform_5(%arg0: i32) -> (i32, i32) {
    %c0_i32 = arith.constant 0 : i32
    %c0_i32_0 = arith.constant 0 : i32
    %c0_i32_1 = arith.constant 0 : i32
    return %c0_i32, %c0_i32_0 : i32, i32
  }
  func.func @transform_6(%arg0: i32) -> (i32, i32) {
    %c0_i32 = arith.constant 0 : i32
    %c0_i32_0 = arith.constant 0 : i32
    %c0_i32_1 = arith.constant 0 : i32
    return %c0_i32, %c0_i32_0 : i32, i32
  }
  func.func @transform_7(%arg0: i32) -> (i32, i32) {
    %c0_i32 = arith.constant 0 : i32
    %c0_i32_0 = arith.constant 0 : i32
    return %arg0, %c0_i32 : i32, i32
  }
}

</mosaic_0001>

<bundles_post_ra>
// kernel: mlp_forward.1
= control target key start
LH: loop header
LB: loop body
LE: loop exit
PB: predicated region body
PF: predicated region fallthrough
CT: control target
= control target key end

     0   :  { %s2109_s0 = inlined_call_operand.hbm [shape: bf16[32,784], index: 0, kind: input, shape index: {}]   ;;  %s2110_s1 = inlined_call_operand.hbm [shape: bf16[784,128], index: 1, kind: input, shape index: {}]   ;;  %s2111_s2 = inlined_call_operand.vmem [shape: f32[1,128], index: 2, kind: input, shape index: {}]   ;;  %s2112_s3 = inlined_call_operand.hbm [shape: bf16[128,128], index: 3, kind: input, shape index: {}]   ;;  %s2113_s4 = inlined_call_operand.vmem [shape: f32[1,128], index: 4, kind: input, shape index: {}]   ;;  %s2114_s5 = inlined_call_operand.hbm [shape: bf16[128,128], index: 5, kind: input, shape index: {}]   ;;  %s2115_s6 = inlined_call_operand.vmem [shape: f32[1,128], index: 6, kind: input, shape index: {}]   ;;  %s2116_s7 = inlined_call_operand.hbm [shape: bf16[32,128], index: 7, kind: output, shape index: {}]  }
   0x1   :  { %2121 = sst [smem:[#allocation15_spill]] %s2110_s1 }
   0x2   :  { %2122 = sst [smem:[#allocation16_spill]] %s2112_s3 }
   0x3   :  { %12 = vsyncpa [#allocation3], 0 }
   0x4   :  { %14 = vsyncpa [#allocation3 + $0x1], 0 }
   0x5   :  { %15 = vsyncpa [#allocation6], 0 }
   0x6   :  { %16 = vsyncpa [#allocation9], 0 }
   0x7   :  { %17 = vsyncpa [#allocation4], 0 }
   0x8   :  { %19 = vsyncpa [#allocation4 + $0x1], 0  ;;  %s1895_s24 = smov 0   ;;  %s1897_s25 = smov 0  }
   0x9   :  { %s1899_s26 = smov 0   ;;  %s1901_s27 = smov 0  }
   0xa LB: > { %s1916_s28 = sadd.s32 4294967295, %s1844_s27   ;;  %s1282_s29 = sadd.s32 4294967294, %s1844_s27   ;;  %s1844_s27 = sphi %s1901_s27, %s2143_s27   ;;  %s1840_s26 = sphi %s1899_s26, %s2142_s26   ;;  %s1836_s25 = sphi %s1897_s25, %s2141_s25   ;;  %s1832_s24 = sphi %s1895_s24, %s2140_s24  }
   0xb   : > { %p45_p0 = scmp.ne.s32.totalorder %s1836_s25, %s1832_s24  ;;  %p2117_p1 = scmp.eq.s32.totalorder %s1916_s28, 0 }
   0xc   : > { %p201_p3 = scmp.eq.s32.totalorder %s1282_s29, 3  ;;  %p1283_p5 = scmp.ge.s32.totalorder %s1844_s27, 1 }
   0xd   : > { %p1925_p4 = por %p2117_p1, %p45_p0  ;;  %p208_p7 = scmp.lt.s32.totalorder %s1844_s27, 5 }
   0xe   : > { %p1930_p6 = por %p201_p3, %p45_p0  ;;  %s1846_s10 = smov [#allocation5]  }
   0xf   : > { %s2123_s30 = scalar_select %p1925_p4, 1, 0 }
  0x10   : > { %s2124_s8 = scalar_select %p1930_p6, 1, 0 }
  0x11   : > { %p1935_p8 = pnand %p1283_p5, %p208_p7  ;;  %s220_s11 = sshll.u32 %s1846_s10, 4  ;;  %s221_s11 = int_to_ptr.vmem [resolvable:$true] %s220_s11 }
  0x12   : > { %s1847_s13 = smov [#allocation7]   ;;  %s1848_s15 = smov [#allocation8]  }
  0x13   : > { %s2125_s9 = scalar_select %p1935_p8, 1, 0 }
  0x14   : > { %p1525_p9 = pneg %p1935_p8  ;;  %s236_s14 = sshll.u32 %s1847_s13, 4  ;;  %s237_s14 = int_to_ptr.vmem [resolvable:$true] %s236_s14 }
  0x15   : > { %s252_s16 = sshll.u32 %s1848_s15, 4  ;;  %s1677_s17 = scalar_lea.vmem %s221_s11, 6272  ;;  %s253_s16 = int_to_ptr.vmem [resolvable:$true] %s252_s16 }
  0x16   : > { %p1943_p10 = pnand %p1525_p9, %p2117_p1  ;;  %p1678_p12 = scmp.ne.s32.totalorder %s221_s11, %s1677_s17 }
  0x17   : > { %p1685_p3 = scmp.lt.s32.totalorder %s221_s11, %s221_s11  ;;  %p1686_p5 = scmp.lt.s32.totalorder %s1677_s17, %s1677_s17 }
  0x18   : > { %p1668_p11 = pneg %p1943_p10 }
  0x19   : > { %p1687_p7 = por %p1686_p5, %p1685_p3 }
  0x1a   : > { %p1680_p13 = pnand %p1678_p12, %p1668_p11 }
  0x1c   : > { %p1681_p0 = pneg %p1680_p13 }
  0x1e   : > { %p1688_p9 = pnand %p1687_p7, %p1681_p0 }
  0x20   : > { %1691 = shalt.err (!%p1688_p9)
}
  0x21   : > { %s1849_s18 = smov 64   ;;  %s1850_s19 = smov 4  }
  0x22   : > { %s2127_s1 = sld [smem:[#allocation15_spill]]  ;;  %s1703_s22 = scalar_lea.vmem %s237_s14, 1024 }
  0x23   : > { %p1704_p1 = scmp.ne.s32.totalorder %s237_s14, %s1703_s22  ;;  %p1711_p2 = scmp.lt.s32.totalorder %s237_s14, %s237_s14 }
  0x24   : > { %p1712_p6 = scmp.lt.s32.totalorder %s1703_s22, %s1703_s22 }
  0x25   : > { %p1706_p12 = pnand %p1704_p1, %p1668_p11 }
  0x26   : > { %p1713_p3 = por %p1712_p6, %p1711_p2 }
  0x27   : > { %p1707_p13 = pneg %p1706_p12 }
  0x28   : > { %1528 = dma.hbm_to_vmem [thread:$0]  (!%p1943_p10), %s2127_s1, 6272, %s221_s11, [#allocation6], %s1849_s18, %s1849_s18, %s1850_s19  }
  0x29   : > { %p1714_p0 = pnand %p1713_p3, %p1707_p13 }
  0x2b   : > { %1717 = shalt.err (!%p1714_p0)
}
  0x2c   : > { %s2128_s3 = sld [smem:[#allocation16_spill]]  ;;  %s1729_s10 = scalar_lea.vmem %s253_s16, 1024 }
  0x2d   : > { %p1730_p5 = scmp.ne.s32.totalorder %s253_s16, %s1729_s10  ;;  %p1737_p9 = scmp.lt.s32.totalorder %s253_s16, %s253_s16 }
  0x2e   : > { %p1738_p12 = scmp.lt.s32.totalorder %s1729_s10, %s1729_s10 }
  0x2f   : > { %p1732_p7 = pnand %p1730_p5, %p1668_p11 }
  0x30   : > { %p1739_p4 = por %p1738_p12, %p1737_p9 }
  0x31   : > { %p1733_p1 = pneg %p1732_p7 }
  0x32   : > { %1531 = dma.hbm_to_vmem [thread:$0]  (!%p1943_p10), %s2128_s3, 1024, %s237_s14, [#allocation6], %s1849_s18, %s1849_s18, %s1850_s19  }
  0x33   : > { %p1740_p2 = pnand %p1739_p4, %p1733_p1 }
  0x35   : > { %1743 = shalt.err (!%p1740_p2)
}
  0x36   : > { %1534 = dma.hbm_to_vmem [thread:$0]  (!%p1943_p10), %s2114_s5, 1024, %s253_s16, [#allocation9], %s1849_s18, %s1849_s18, %s1850_s19  }
  0x37   : > { %s1974_s14 = sadd.s32 1, %s1844_s27   ;;  %s32_s12 = sadd.s32 1, %s1840_s26 }
  0x38   : > { %s29_s15 = ssub.s32 %s1844_s27, %s1974_s14  ;;  %p39_p6 = scmp.ne.s32.totalorder %s1840_s26, %s1836_s25 }
  0x39   : > { %p30_p4 = scmp.eq.s32.totalorder %s29_s15, 0  ;;  %p40_p11 = scmp.eq.s32.totalorder %s1844_s27, 0 }
  0x3a   : > { %p1546_p13 = scmp.lt.s32.totalorder %s1844_s27, 4  ;;  %p2129_p0 = scmp.eq.s32.totalorder %s1916_s28, 3 }
  0x3b   : > { %s1984_s17 = scalar_select %p30_p4, %s1840_s26, %s32_s12  }
  0x3c   : > { %p41_p3 = por %p40_p11, %p39_p6  ;;  %p1988_p5 = por %p2129_p0, %p39_p6 }
  0x3d   : > { %s269_s21 = sand.u32 1, %s1840_s26   ;;  %s1507_s22 = smul.u32 448, %s1844_s27 }
  0x3e   : > { %s2130_s20 = scalar_select %p1988_p5, 1, 0 }
  0x3f   : > { %s1506_s16 = smul.u32 28, %s269_s21  ;;  %p1994_p10 = pnand %p1546_p13, %p41_p3 }
  0x40   : > { %s2001_s29 = scalar_lea.hbm %s2109_s0, %s1507_s22  ;;  %s270_s13 = scalar_lea.sflag [#allocation3], %s269_s21 }
  0x41   : > { %s273_s10 = scalar_lea.vmem [#allocation2], %s1506_s16  ;;  %s1744_s15 = scalar_lea.hbm %s2001_s29, 448 }
  0x42   : > { %s281_s11 = sshll.u32 %s273_s10, 4  ;;  %p1745_p7 = scmp.ne.s32.totalorder %s2001_s29, %s1744_s15  ;;  %s282_s11 = int_to_ptr.vmem [resolvable:$true] %s281_s11 }
  0x43   : > { %p1746_p1 = pneg %p1994_p10  ;;  %s1749_s19 = scalar_lea.hbm %s2109_s0, 1792 }
  0x44   : > { %p1750_p2 = scmp.lt.s32.totalorder %s2001_s29, %s2109_s0  ;;  %p1751_p4 = scmp.lt.s32.totalorder %s1749_s19, %s1744_s15 }
  0x45   : > { %p1747_p9 = pnand %p1746_p1, %p1745_p7 }
  0x46   : > { %p1752_p6 = por %p1751_p4, %p1750_p2 }
  0x47   : > { %p1748_p12 = pneg %p1747_p9 }
  0x49   : > { %p1753_p11 = pnand %p1752_p6, %p1748_p12 }
  0x4b   : > { %1756 = shalt.err (!%p1753_p11)
}
  0x4c   : > { %s1757_s16 = scalar_lea.vmem %s282_s11, 448  ;;  %s1851_s21 = smov [#allocation2]  }
  0x4d   : > { %p1758_p13 = scmp.ne.s32.totalorder %s282_s11, %s1757_s16  ;;  %s1762_s10 = sshll.u32 %s1851_s21, 4  ;;  %s1763_s10 = int_to_ptr.vmem [resolvable:$false] %s1762_s10 }
  0x4e   : > { %s1764_s3 = scalar_lea.vmem %s1763_s10, 896  ;;  %p1765_p7 = scmp.lt.s32.totalorder %s282_s11, %s1763_s10 }
  0x4f   : > { %p1760_p3 = pnand %p1758_p13, %p1746_p1  ;;  %p1766_p9 = scmp.lt.s32.totalorder %s1764_s3, %s1757_s16 }
  0x51   : > { %p1761_p0 = pneg %p1760_p3  ;;  %p1767_p5 = por %p1766_p9, %p1765_p7 }
  0x53   : > { %p1768_p8 = pnand %p1767_p5, %p1761_p0 }
  0x55   : > { %1771 = shalt.err (!%p1768_p8)
}
  0x56   : > { %1538 = dma.hbm_to_vmem [thread:$0]  (!%p1994_p10), %s2001_s29, 448, %s282_s11, %s270_s13  }
  0x57   : > { %p2132_p12 = scmp.ne.s32.totalorder %s2125_s9, 0 }
  0x58   : > { %s2020_s1 = sand.u32 (!%p2132_p12), 1, %s1836_s25   ;;  %p2133_p1 = scmp.ne.s32.totalorder (!%p2132_p12), %s2123_s30, 0 }
  0x59   : > { %290 = sbr.rel (%p2132_p12) target bundleno = 1093 (0x445), region = 48  ;;  %s293_s12 = scalar_lea.sflag (!%p2132_p12), [#allocation3], %s2020_s1 }
  0x5a   : > { %s1508_s15 = smul.u32 (!%p2132_p12), 28, %s2020_s1 }
  0x5c   : > { %s2024_s19 = scalar_lea.vmem (!%p2132_p12), [#allocation2], %s1508_s15 }
  0x5e   : > { %1815 = dma.done.wait (%p2133_p1), %s293_s12, 448  }
  0x5f   : > { %1817 = vsyncadd (%p2133_p1), %s293_s12, 4294966848  ;;  %p2134_p8 = scmp.eq.s32.totalorder %s1916_s28, 0 }
  0x61   : > { %1819 = dma.done.wait (%p2134_p8), [#allocation6], 7296   ;;  %p2135_p5 = pmov %p2134_p8 }
  0x63   : > { %1821 = vsyncadd (%p2135_p5), [#allocation6], 4294960000  ;;  %p2136_p10 = pmov %p2135_p5 }
  0x64   : > { %p2137_p2 = pmov %p2135_p5 }
  0x65   : > { %1823 = dma.done.wait (%p2136_p10), [#allocation9], 1024  }
  0x66   : > { %1825 = vsyncadd (%p2137_p2), [#allocation9], 4294966272  ;;  %v1590_v0 = vld [vmem:[#allocation5 + $0x78] sm:$0xff]   ;;  %v1594_v4 = vld [vmem:[#allocation5 + $0x70] sm:$0xff]   ;;  %v1852_v43 = vmov 0.0   ;;  %vm1853_vm0 = vmmov 0  }
  0x67   : > { %v1591_v1 = vld [vmem:[#allocation5 + $0x38] sm:$0xff]   ;;  %1374 = vmatprep.subr.bf16.mxu0 %v1590_v0  ;;  %v1595_v5 = vld [vmem:[#allocation5 + $0x30] sm:$0xff]   ;;  %v1598_v8 = vld [vmem:[#allocation5 + $0x68] sm:$0xff]   ;;  %vm767_vm1 = vcmask 130048   ;;  %s1293_s13 = sshll.u32 %s2020_s1, 2  ;;  %s1371_s23 = sshll.u32 %s1916_s28, 6 }
  0x68   : > { %v1592_v2 = vld [vmem:[#allocation5 + $0xf8] sm:$0xff]   ;;  %1375 = vmatpush3.bf16.msra.mxu0 %v1591_v1  ;;  %v1596_v6 = vld [vmem:[#allocation5 + $0xf0] sm:$0xff]   ;;  %v1599_v9 = vld [vmem:[#allocation5 + $0x28] sm:$0xff]   ;;  %s338_s22 = scalar_lea.vmem [#allocation10], %s1293_s13  ;;  %s1181_s15 = scalar_lea.hbm %s2116_s7, %s1371_s23 }
  0x69   : > { %v1593_v3 = vld [vmem:[#allocation5 + $0xb8] sm:$0xff]   ;;  %1396 = vmatprep.subr.bf16.mxu1 %v1592_v2  ;;  %1376 = vmatprep.subr.bf16.mxu0 %v1594_v4  ;;  %v1597_v7 = vld [vmem:[#allocation5 + $0xb0] sm:$0xff]   ;;  %v1600_v10 = vld [vmem:[#allocation5 + $0xe8] sm:$0xff]   ;;  %s1183_s16 = sshll.u32 %s338_s22, 4  ;;  %s1170_s12 = scalar_lea.sflag [#allocation4], %s2020_s1  ;;  %s1184_s16 = int_to_ptr.vmem [resolvable:$true] %s1183_s16 }
  0x6a   : > { %1397 = vmatpush3.bf16.msra.mxu1 %v1593_v3  ;;  %v1601_v11 = vld [vmem:[#allocation5 + $0xa8] sm:$0xff]   ;;  %v1602_v12 = vld [vmem:[#allocation5 + $0x60] sm:$0xff]   ;;  %v1606_v16 = vld [vmem:[#allocation5 + $0x58] sm:$0xff]   ;;  %p2138_p6 = scmp.ne.s32.totalorder %s2130_s20, 0  ;;  %s1854_s3 = smov [#allocation10]  }
  0x6b   : > { %1398 = vmatprep.subr.bf16.mxu1 %v1596_v6  ;;  %v1603_v13 = vld [vmem:[#allocation5 + $0x20] sm:$0xff]   ;;  %v1607_v17 = vld [vmem:[#allocation5 + $0x18] sm:$0xff]   ;;  %v1610_v20 = vld [vmem:[#allocation5 + $0x50] sm:$0xff]   ;;  %s1776_s30 = sshll.u32 %s1854_s3, 4  ;;  %s1777_s30 = int_to_ptr.vmem [resolvable:$false] %s1776_s30 }
  0x6c   : > { %1377 = vmatpush3.bf16.msra.mxu0 %v1595_v5  ;;  %v1604_v14 = vld [vmem:[#allocation5 + $0xe0] sm:$0xff]   ;;  %v1608_v18 = vld [vmem:[#allocation5 + $0xd8] sm:$0xff]   ;;  %v1611_v21 = vld [vmem:[#allocation5 + $0x10] sm:$0xff]   ;;  %s1778_s28 = scalar_lea.vmem %s1777_s30, 128  ;;  %p1779_p3 = scmp.lt.s32.totalorder %s1184_s16, %s1777_s30 }
  0x6d   : > { %1378 = vmatprep.subr.bf16.mxu0 %v1598_v8  ;;  %v1605_v15 = vld [vmem:[#allocation5 + $0xa0] sm:$0xff]   ;;  %v1609_v19 = vld [vmem:[#allocation5 + $0x98] sm:$0xff]   ;;  %v1612_v22 = vld [vmem:[#allocation5 + $0xd0] sm:$0xff]  }
  0x6e   : > { %1399 = vmatpush3.bf16.msra.mxu1 %v1597_v7  ;;  %v1613_v23 = vld [vmem:[#allocation5 + $0x90] sm:$0xff]   ;;  %v1614_v24 = vld [vmem:[#allocation5 + $0x48] sm:$0xff]   ;;  %v1618_v28 = vld [vmem:[#allocation5 + $0x40] sm:$0xff]  }
  0x6f   : > { %1400 = vmatprep.subr.bf16.mxu1 %v1600_v10  ;;  %v1615_v25 = vld [vmem:[#allocation5 + $0x8] sm:$0xff]   ;;  %v1619_v29 = vld [vmem:[#allocation5] sm:$0xff]   ;;  %v1624_v35 = vld [vmem:[#allocation5 + $0x178] sm:$0xff]  }
  0x70   : > { %1379 = vmatpush3.bf16.msra.mxu0 %v1599_v9  ;;  %v1616_v26 = vld [vmem:[#allocation5 + $0xc8] sm:$0xff]   ;;  %v1620_v30 = vld [vmem:[#allocation5 + $0xc0] sm:$0xff]   ;;  %v1627_v39 = vld [vmem:[#allocation5 + $0x138] sm:$0xff]  }
  0x71   : > { %1380 = vmatprep.subr.bf16.mxu0 %v1602_v12  ;;  %v1617_v27 = vld [vmem:[#allocation5 + $0x88] sm:$0xff]   ;;  %v1623_v34 = vld [vmem:[#allocation5 + $0x80] sm:$0xff]   ;;  %v1628_v40 = vld [vmem:[#allocation5 + $0x170] sm:$0xff]  }
  0x72   : > { %1401 = vmatpush3.bf16.msra.mxu1 %v1601_v11  ;;  %v340_v31 = vld [vmem:[%s2024_s19] sm:$0xff]  ;;  %v341_v36 = vld [vmem:[%s2024_s19 + $0x8] sm:$0xff]  ;;  %v1634_v47 = vld [vmem:[#allocation5 + $0x158] sm:$0xff]  }
  0x73   : > { %1402 = vmatprep.subr.bf16.mxu1 %v1604_v14  ;;  %v1295_v32 = vcombine.low %v340_v31, %v340_v31  ;;  %v1296_v33 = vcombine.high %v340_v31, %v340_v31  ;;  %v1297_v37 = vcombine.low %v341_v36, %v341_v36  ;;  %v1298_v38 = vcombine.high %v341_v36, %v341_v36  ;;  %v1629_v41 = vld [vmem:[#allocation5 + $0x130] sm:$0xff]   ;;  %v1630_v42 = vld [vmem:[#allocation5 + $0x168] sm:$0xff]   ;;  %v1632_v45 = vld [vmem:[#allocation5 + $0x160] sm:$0xff]  }
  0x74   : > { %1381 = vmatpush3.bf16.msra.mxu0 %v1603_v13  ;;  %v1631_v44 = vld [vmem:[#allocation5 + $0x128] sm:$0xff]   ;;  %v1633_v46 = vld [vmem:[#allocation5 + $0x120] sm:$0xff]   ;;  %v1635_v48 = vld [vmem:[#allocation5 + $0x118] sm:$0xff]  }
  0x75   : > { %1382 = vmatprep.subr.bf16.mxu0 %v1606_v16  ;;  %803 = vmatprep.mubr.bf16.mxu0 %v1296_v33  ;;  %v1636_v49 = vld [vmem:[#allocation5 + $0x150] sm:$0xff]   ;;  %v1642_v50 = vld [vmem:[#allocation5 + $0x180] sm:$0xff]   ;;  %v1638_v55 = vld [vmem:[#allocation5 + $0x148] sm:$0xff]  }
  0x76   : > { %1403 = vmatpush3.bf16.msra.mxu1 %v1605_v15  ;;  %843 = vmatprep.mubr.bf16.mxu1 %v1298_v38  ;;  %v342_v51 = vld [vmem:[%s2024_s19 + $0x10] sm:$0xff]  ;;  %v1645_v54 = vld [vmem:[%s2024_s19 + $0x18] ss:$0 sps:$4 sm:$0xff]   ;;  %v1639_v56 = vld [vmem:[#allocation5 + $0x108] sm:$0xff]   ;;  %s1772_s19 = scalar_lea.vmem %s1184_s16, 64 }
  0x77   : > { %1404 = vmatprep.subr.bf16.mxu1 %v1608_v18  ;;  %v1637_v52 = vld [vmem:[#allocation5 + $0x110] sm:$0xff]   ;;  %v1300_v53 = vcombine.high %v342_v51, %v342_v51  ;;  %v1640_v57 = vld [vmem:[#allocation5 + $0x140] sm:$0xff]   ;;  %v1299_v59 = vcombine.low %v342_v51, %v342_v51  ;;  %v1647_v61 = vld [vmem:[#allocation7 + $0x30] sm:$0xff]   ;;  %p1773_p4 = scmp.ne.s32.totalorder %s1184_s16, %s1772_s19  ;;  %p1780_p0 = scmp.lt.s32.totalorder %s1778_s28, %s1772_s19 }
  0x78   : > { %1383 = vmatpush3.bf16.msra.mxu0 %v1607_v17  ;;  %v1641_v58 = vld [vmem:[#allocation5 + $0x100] sm:$0xff]   ;;  %v1648_v62 = vld [vmem:[#allocation7 + $0x28] sm:$0xff]   ;;  %v1649_v63 = vld [vmem:[#allocation7 + $0x20] sm:$0xff]  }
  0x79   : > { %1384 = vmatprep.subr.bf16.mxu0 %v1610_v20  ;;  %v1646_v60 = vld [vmem:[#allocation7 + $0x38] sm:$0xff]   ;;  %v1651_v1 = vld [vmem:[#allocation7 + $0x10] sm:$0xff]   ;;  %v1652_v2 = vld [vmem:[#allocation7 + $0x8] sm:$0xff]   ;;  %p1774_p11 = pnand %p1773_p4, %p2138_p6  ;;  %p1781_p7 = por %p1780_p0, %p1779_p3 }
  0x7a   : > { %1405 = vmatpush3.bf16.msra.mxu1 %v1609_v19  ;;  %v1650_v0 = vld [vmem:[#allocation7 + $0x18] sm:$0xff]   ;;  %v1653_v3 = vld [vmem:[#allocation7] sm:$0xff]   ;;  %v1655_v5 = vld [vmem:[#allocation8 + $0x30] sm:$0xff]  }
  0x7b   : > { %1406 = vmatprep.subr.bf16.mxu1 %v1612_v22  ;;  %v1654_v4 = vld [vmem:[#allocation8 + $0x38] sm:$0xff]   ;;  %v1656_v6 = vld [vmem:[#allocation8 + $0x28] sm:$0xff]   ;;  %v1657_v7 = vld [vmem:[#allocation8 + $0x20] sm:$0xff]   ;;  %p1775_p13 = pneg %p1774_p11 }
  0x7c   : > { %1385 = vmatpush3.bf16.msra.mxu0 %v1611_v21  ;;  %v1658_v8 = vld [vmem:[#allocation8 + $0x18] sm:$0xff]   ;;  %v1659_v9 = vld [vmem:[#allocation8 + $0x10] sm:$0xff]   ;;  %v1660_v36 = vld [vmem:[#allocation8 + $0x8] sm:$0xff]  }
  0x7d   : > { %1386 = vmatprep.subr.bf16.mxu0 %v1614_v24  ;;  %v1352_v38 = vld [vmem:[%s2113_s4] ss:$0 sm:$0xff]  ;;  %p1782_p9 = pnand %p1781_p7, %p1775_p13 }
  0x7e   : > { %1407 = vmatpush3.bf16.msra.mxu1 %v1613_v23  ;;  %v1294_v23 = vld [vmem:[%s2111_s2] ss:$0 sm:$0xff] }
  0x7f   : > { %1408 = vmatprep.subr.bf16.mxu1 %v1616_v26 }
  0x80   : > { %1387 = vmatpush3.bf16.msra.mxu0 %v1615_v25 }
  0x81   : > { %1388 = vmatprep.subr.bf16.mxu0 %v1618_v28 }
  0x82   : > { %1409 = vmatpush3.bf16.msra.mxu1 %v1617_v27 }
  0x83   : > { %1410 = vmatprep.subr.bf16.mxu1 %v1620_v30 }
  0x84   : > { %1389 = vmatpush3.bf16.msra.mxu0 %v1619_v29 }
  0x85   : > { %1418 = vmatprep.subr.bf16.mxu0 %v1624_v35 }
  0x86   : > { %1411 = vmatpush3.bf16.msra.mxu1 %v1623_v34 }
  0x87   : > { %804 = vmatmul.mubr.bf16.vlgmr.msra.gmra.mxu0 %v1295_v32  ;;  %1460 = vmatprep.subr.bf16.mxu1 %v1852_v43 }
  0x88   : > { %1419 = vmatpush3.bf16.msra.mxu0 %v1627_v39  ;;  %883 = vmatprep.mubr.bf16.mxu0 %v1300_v53 }
  0x89   : > { %844 = vmatmul.mubr.bf16.vlgmr.msra.gmra.mxu1 %v1297_v37  ;;  %1420 = vmatprep.subr.bf16.mxu0 %v1628_v40  ;;  %v1661_v37 = vld [vmem:[#allocation8] sm:$0xff]  }
  0x8a   : > { %1462 = vmatprep.mubr.msk.bf16.mxu1 %vm1853_vm0, %v1852_v43  ;;  %1461 = vmatpush3.bf16.msra.mxu1 %v1642_v50 }
  0x8b   : > { %1466 = vmatprep.subr.bf16.mxu1 %v1852_v43 }
  0x8c   : > { %1421 = vmatpush3.bf16.msra.mxu0 %v1629_v41 }
  0x8d   : > { %1422 = vmatprep.subr.bf16.mxu0 %v1630_v42 }
  0x90   : > { %1423 = vmatpush3.bf16.msra.mxu0 %v1631_v44 }
  0x91   : > { %1424 = vmatprep.subr.bf16.mxu0 %v1632_v45  ;;  %1463 = vmatmul.mubr.msk.bf16.vlgmr.msra.gmra.mxu1 %vm767_vm1, %v1645_v54 }
  0x92   : > { %1482 = vmatprep.mubr.msk.bf16.mxu1 %vm1853_vm0, %v1852_v43  ;;  %1467 = vmatpush3.bf16.msra.mxu1 %v1646_v60 }
  0x93   : > { %1468 = vmatprep.subr.bf16.mxu1 %v1852_v43 }
  0x94   : > { %1425 = vmatpush3.bf16.msra.mxu0 %v1633_v46 }
  0x95   : > { %1426 = vmatprep.subr.bf16.mxu0 %v1634_v47  ;;  %v1361_v47 = vld [vmem:[%s2115_s6] ss:$0 sm:$0xff] }
  0x96   : > { %1469 = vmatpush3.bf16.msra.mxu1 %v1647_v61 }
  0x97   : > { %1470 = vmatprep.subr.bf16.mxu1 %v1852_v43 }
  0x98   : > { %1427 = vmatpush3.bf16.msra.mxu0 %v1635_v48 }
  0x99   : > { %1428 = vmatprep.subr.bf16.mxu0 %v1636_v49 }
  0x9a   : > { %1471 = vmatpush3.bf16.msra.mxu1 %v1648_v62 }
  0x9b   : > { %1472 = vmatprep.subr.bf16.mxu1 %v1852_v43 }
  0x9c   : > { %1429 = vmatpush3.bf16.msra.mxu0 %v1637_v52 }
  0x9d   : > { %1430 = vmatprep.subr.bf16.mxu0 %v1638_v55 }
  0x9e   : > { %1473 = vmatpush3.bf16.msra.mxu1 %v1649_v63 }
  0x9f   : > { %1474 = vmatprep.subr.bf16.mxu1 %v1852_v43 }
  0xa0   : > { %1431 = vmatpush3.bf16.msra.mxu0 %v1639_v56 }
  0xa1   : > { %1432 = vmatprep.subr.bf16.mxu0 %v1640_v57 }
  0xa2   : > { %1475 = vmatpush3.bf16.msra.mxu1 %v1650_v0 }
  0xa3   : > { %1476 = vmatprep.subr.bf16.mxu1 %v1852_v43 }
  0xa4   : > { %1433 = vmatpush3.bf16.msra.mxu0 %v1641_v58 }
  0xa5   : > { %1486 = vmatprep.subr.bf16.mxu0 %v1852_v43 }
  0xa6   : > { %1477 = vmatpush3.bf16.msra.mxu1 %v1651_v1 }
  0xa7   : > { %884 = vmatmul.mubr.bf16.vlgmr.msra.gmra.mxu0 %v1299_v59  ;;  %1478 = vmatprep.subr.bf16.mxu1 %v1852_v43 }
  0xa8   : > { %1502 = vmatprep.mubr.msk.bf16.mxu0 %vm1853_vm0, %v1852_v43  ;;  %1487 = vmatpush3.bf16.msra.mxu0 %v1654_v4 }
  0xa9   : > { %1488 = vmatprep.subr.bf16.mxu0 %v1852_v43 }
  0xaa   : > { %1479 = vmatpush3.bf16.msra.mxu1 %v1652_v2 }
  0xab   : > { %1480 = vmatprep.subr.bf16.mxu1 %v1852_v43 }
  0xac   : > { %1489 = vmatpush3.bf16.msra.mxu0 %v1655_v5 }
  0xad   : > { %1490 = vmatprep.subr.bf16.mxu0 %v1852_v43 }
  0xae   : > { %1481 = vmatpush3.bf16.msra.mxu1 %v1653_v3 }
  0xb0   : > { %1491 = vmatpush3.bf16.msra.mxu0 %v1656_v6 }
  0xb1   : > { %1492 = vmatprep.subr.bf16.mxu0 %v1852_v43 }
  0xb4   : > { %1493 = vmatpush3.bf16.msra.mxu0 %v1657_v7 }
  0xb5   : > { %1494 = vmatprep.subr.bf16.mxu0 %v1852_v43 }
  0xb8   : > { %1495 = vmatpush3.bf16.msra.mxu0 %v1658_v8 }
  0xb9   : > { %1496 = vmatprep.subr.bf16.mxu0 %v1852_v43 }
  0xbc   : > { %1497 = vmatpush3.bf16.msra.mxu0 %v1659_v9 }
  0xbd   : > { %1498 = vmatprep.subr.bf16.mxu0 %v1852_v43 }
  0xc0   : > { %1499 = vmatpush3.bf16.msra.mxu0 %v1660_v36 }
  0xc1   : > { %1500 = vmatprep.subr.bf16.mxu0 %v1852_v43 }
  0xc4   : > { %1501 = vmatpush3.bf16.msra.mxu0 %v1661_v37 }
 0x147   : > { %v1390_v10 = vpop.f32.mrf.mxu0 }
 0x149   : > { %v1391_v11 = vpop.f32.mrf.mxu0  ;;  %v1412_v12 = vpop.f32.mrf.mxu1 }
 0x14a   : > { %v1392_v22 = vadd.f32 %v1391_v11, %v1390_v10 }
 0x14b   : > { %v1393_v13 = vpop.f32.mrf.mxu0  ;;  %v1413_v14 = vpop.f32.mrf.mxu1 }
 0x14c   : > { %v806_v24 = vadd.f32 %v1392_v22, %v1294_v23  ;;  %v1414_v25 = vadd.f32 %v1413_v14, %v1412_v12 }
 0x14d   : > { %v1394_v15 = vpop.f32.mrf.mxu0  ;;  %v1415_v16 = vpop.f32.mrf.mxu1 }
 0x14e   : > { %v846_v28 = vadd.f32 %v1414_v25, %v806_v24 }
 0x14f   : > { %v1416_v17 = vpop.f32.mrf.mxu1 }
 0x151   : > { %v925_v18 = vpop.f32.mrf.mxu1 }
 0x153   : > { %v1464_v19 = vpop.f32.mrf.mxu1 }
 0x155   : > { %v928_v20 = vpop.f32.mrf.mxu1 }
 0x157   : > { %v1465_v21 = vpop.f32.mrf.mxu1 }
 0x167   : > { %v1434_v26 = vpop.f32.mrf.mxu0 }
 0x169   : > { %v1435_v27 = vpop.f32.mrf.mxu0 }
 0x16a   : > { %v1436_v29 = vadd.f32 %v1435_v27, %v1434_v26 }
 0x16b   : > { %v1437_v30 = vpop.f32.mrf.mxu0 }
 0x16c   : > { %v886_v31 = vadd.f32 %v1436_v29, %v846_v28 }
 0x16d   : > { %v1438_v32 = vpop.f32.mrf.mxu0 }
 0x16e   : > { %v926_v33 = vadd.f32 %v925_v18, %v886_v31 }
 0x170   : > { %v931_v34 = vmax.f32 %v926_v33, 0.0 }
 0x172   : > { %v932_v35 = vpack.c.bf16 %v931_v34, %v931_v34 }
 0x174   : > { %1483 = vmatmul.mubr.bf16.vlgmr.msra.gmra.mxu1 %v932_v35 }
 0x234   : > { %v1038_v39 = vpop.f32.mrf.mxu1 }
 0x235   : > { %v1039_v40 = vadd.f32 %v1352_v38, %v1038_v39 }
 0x236   : > { %v1484_v41 = vpop.f32.mrf.mxu1 }
 0x237   : > { %v1044_v42 = vmax.f32 %v1039_v40, 0.0 }
 0x238   : > { %v1041_v44 = vpop.f32.mrf.mxu1 }
 0x239   : > { %v1045_v45 = vpack.c.bf16 %v1044_v42, %v1044_v42 }
 0x23a   : > { %v1485_v46 = vpop.f32.mrf.mxu1 }
 0x23b   : > { %1503 = vmatmul.mubr.bf16.vlgmr.msra.gmra.mxu0 %v1045_v45 }
 0x2fb   : > { %v1151_v43 = vpop.f32.mrf.mxu0 }
 0x2fc   : > { %v1152_v48 = vadd.f32 %v1361_v47, %v1151_v43 }
 0x2fd   : > { %v1504_v49 = vpop.f32.mrf.mxu0 }
 0x2fe   : > { %1157 = vmax.xlane.f32.xlu0 %v1152_v48 }
 0x2ff   : > { %v1154_v50 = vpop.f32.mrf.mxu0 }
 0x301   : > { %v1505_v51 = vpop.f32.mrf.mxu0 }
 0x387   : > { %v1158_v52 = vpop.xlane.xlu0 %1157 }
 0x388   : > { %v1159_v53 = vsub.f32 %v1152_v48, %v1158_v52 }
 0x38a   : > { %v1160_v54 = vmul.f32 1.442695, %v1159_v53 }
 0x38c   : > { %1662 = vpow2.f32 %v1160_v54 }
 0x399   : > { %v1663_v55 = vpop.eup %1662 }
 0x39a   : > { %1162 = vadd.xlane.f32.xlu0 %v1663_v55 }
 0x423   : > { %v1163_v56 = vpop.xlane.xlu0 %1162 }
 0x424   : > { %1664 = vlog2.f32 %v1163_v56 }
 0x431   : > { %v1665_v57 = vpop.eup %1664 }
 0x432   : > { %v1165_v58 = vmul.f32 0.6931472, %v1665_v57 }
 0x434   : > { %v1166_v59 = vsub.f32 %v1159_v53, %v1165_v58 }
 0x436   : > { %v1167_v60 = vpack.c.bf16 %v1166_v59, %v1166_v59 }
 0x438   : > { %1168 = vst [vmem:[%s338_s22] sm:$0xf] %v1167_v60 }
 0x439   : > { %1785 = shalt.err (!%p1782_p9)
}
 0x43a   : > { %s1786_s9 = scalar_lea.hbm %s1181_s15, 64  ;;  %s1790_s29 = scalar_lea.hbm %s2116_s7, 256 }
 0x43b   : > { %p1787_p12 = scmp.ne.s32.totalorder %s1181_s15, %s1786_s9  ;;  %p1791_p5 = scmp.lt.s32.totalorder %s1181_s15, %s2116_s7 }
 0x43c   : > { %p1792_p10 = scmp.lt.s32.totalorder %s1790_s29, %s1786_s9 }
 0x43d   : > { %p1788_p1 = pnand %p1787_p12, %p2138_p6 }
 0x43e   : > { %p1793_p2 = por %p1792_p10, %p1791_p5 }
 0x43f   : > { %p1789_p8 = pneg %p1788_p1 }
 0x441   : > { %p1794_p4 = pnand %p1793_p2, %p1789_p8 }
 0x443   : > { %1797 = shalt.err (!%p1794_p4)
}
 0x444   : > { %1523 = dma.vmem_to_hbm [thread:$0]  (%p2138_p6), %s1184_s16, 64, %s1181_s15, %s1170_s12  }
 0x445 PF: > { %p1550_p11 = scmp.ge.s32.totalorder %s1844_s27, 2  ;;  %s1195_s23 = sand.u32 1, %s1832_s24  }
 0x446   : > { %p2139_p13 = scmp.ne.s32.totalorder %s2124_s8, 0  ;;  %s1196_s22 = scalar_lea.sflag [#allocation4], %s1195_s23 }
 0x448   : > { %p1540_p3 = pnand %p1550_p11, %p2139_p13 }
 0x44a   : > { %p1541_p0 = pneg %p1540_p3 }
 0x44c   : > { %1827 = dma.done.wait (%p1541_p0), %s1196_s22, 64  }
 0x44d   : > { %1829 = vsyncadd (%p1541_p0), %s1196_s22, 4294967232  ;;  %p22_p7 = scmp.ge.s32.totalorder %s1974_s14, 6   ;;  %s2140_s24 = smov %s1836_s25 }
 0x44e   : > { %s2141_s25 = smov %s1840_s26  ;;  %s2142_s26 = smov %s1984_s17 }
 0x44f   : > { %s2143_s27 = smov %s1974_s14  ;;  %24 = sbr.rel (!%p22_p7) target bundleno = 10 (0xa), region = 105 }
 0x454   :  { %1201 = vsyncpa [#allocation3], 1 }
 0x455   :  { %1203 = vsyncpa [#allocation3 + $0x1], 1 }
 0x456   :  { %1204 = vsyncpa [#allocation6], 1 }
 0x457   :  { %1205 = vsyncpa [#allocation9], 1 }
 0x458   :  { %1206 = vsyncpa [#allocation4], 1 }
 0x459   :  { %1208 = vsyncpa [#allocation4 + $0x1], 1 }

</bundles_post_ra>
